<compile_context>
chip_gen: v5e
topology: v5e:2x2
jax: 0.10.0
libtpu: 0.0.40
codegen_flags: <defaults>
</compile_context>

<pallas_src>
import functools

import numpy as np
import jax
import jax.numpy as jnp
from jax import lax
from jax.experimental import pallas as pl
from jax.experimental.pallas import tpu as pltpu

EPS = 1e-5  # PyTorch InstanceNorm2d default


def _make_resblock_kernel(C, Hp, Wp, n_valid, compute_dtype):
    """Fused residual block for one image, laid out as (C, P=Hp*Wp)."""
    P = Hp * Wp
    inv_n = 1.0 / float(n_valid)

    def shift_lanes(a, s):
        """b[:, p] = a[:, p + s] for static s; zero where p + s is out of range."""
        if s == 0:
            return a
        rows = a.shape[0]
        z = jnp.zeros((rows, abs(s)), a.dtype)
        if s > 0:
            return jnp.concatenate([a[:, s:], z], axis=1)
        return jnp.concatenate([z, a[:, :s]], axis=1)

    def conv3x3(a, w, b):
        """3x3 conv on the flat padded grid as ONE deep-K matmul.

        a: (C, P) in compute dtype, w: (C, 9C) compute dtype, b: (C, 1) f32.
        Returns (C, P) f32; only interior positions are meaningful."""
        taps = []
        for ky in range(3):
            for kx in range(3):
                taps.append(shift_lanes(a, (ky - 1) * Wp + (kx - 1)))
        stacked = jnp.concatenate(taps, axis=0)                 # (9C, P)
        y = jnp.dot(w, stacked, preferred_element_type=jnp.float32)
        return y + b                                            # (C, P) f32

    def instance_norm(y, valid):
        """InstanceNorm2d (affine=False, biased var): one masked pass."""
        s1 = jnp.sum(y * valid, axis=1, keepdims=True)          # (C, 1)
        s2 = jnp.sum(y * y * valid, axis=1, keepdims=True)      # (C, 1)
        mean = s1 * inv_n
        var = s2 * inv_n - mean * mean
        return (y - mean) * lax.rsqrt(var + EPS)

    def kernel(mask_ref, x_ref, w1_ref, b1_ref, w2_ref, b2_ref, out_ref):
        x = x_ref[0]                          # (C, P) f32, reflection-padded input
        valid = mask_ref[0:1, :]              # (1, P) f32 {0,1}: interior pixels
        col_lo = mask_ref[1:2, :] > 0.5       # col == 0
        col_hi = mask_ref[2:3, :] > 0.5       # col == Wp-1
        row_lo = mask_ref[3:4, :] > 0.5       # row == 0
        row_hi = mask_ref[4:5, :] > 0.5       # row == Hp-1

        # conv1 + InstanceNorm + ReLU (border positions are junk, masked out
        # of the statistics and overwritten by the reflection pad below).
        y1 = conv3x3(x.astype(compute_dtype), w1_ref[...], b1_ref[...])
        h = jnp.maximum(instance_norm(y1, valid), 0.0)          # (C, P) f32

        # In-kernel ReflectionPad2d(1) of h's interior: fix columns first,
        # then rows (corners come out as reflect-of-reflect, like PyTorch).
        hp = jnp.where(col_lo, shift_lanes(h, 2), h)            # col 0    := col 2
        hp = jnp.where(col_hi, shift_lanes(h, -2), hp)          # col Wp-1 := col Wp-3
        hp = jnp.where(row_lo, shift_lanes(hp, 2 * Wp), hp)     # row 0    := row 2
        hp = jnp.where(row_hi, shift_lanes(hp, -2 * Wp), hp)    # row Hp-1 := row Hp-3

        # conv2 + InstanceNorm + residual (residual uses the original f32 x).
        y2 = conv3x3(hp.astype(compute_dtype), w2_ref[...], b2_ref[...])
        out_ref[0] = x + instance_norm(y2, valid)

    return kernel


def _make_masks(H, W):
    """(8, P) f32 constant: rows = [interior, col0, colWp-1, row0, rowHp-1, 0, 0, 0]."""
    Hp, Wp = H + 2, W + 2
    r = np.arange(Hp)[:, None]
    c = np.arange(Wp)[None, :]
    rows = np.zeros((8, Hp * Wp), np.float32)
    rows[0] = ((r >= 1) & (r <= H) & (c >= 1) & (c <= W)).reshape(-1)
    rows[1] = np.broadcast_to(c == 0, (Hp, Wp)).reshape(-1)
    rows[2] = np.broadcast_to(c == Wp - 1, (Hp, Wp)).reshape(-1)
    rows[3] = np.broadcast_to(r == 0, (Hp, Wp)).reshape(-1)
    rows[4] = np.broadcast_to(r == Hp - 1, (Hp, Wp)).reshape(-1)
    return jnp.asarray(rows)


def init_params(key, in_features):
    """Conv weights stored as (Cout, 9*Cin): w[co, (ky*3+kx)*Cin + ci]."""
    k1, k2, k3, k4 = jax.random.split(key, 4)
    C = in_features
    scale = float(1.0 / np.sqrt(9.0 * C))   # ~ PyTorch Conv2d default init scale
    return {
        "w1": jax.random.uniform(k1, (C, 9 * C), jnp.float32, -scale, scale),
        "b1": jax.random.uniform(k2, (C, 1), jnp.float32, -scale, scale),
        "w2": jax.random.uniform(k3, (C, 9 * C), jnp.float32, -scale, scale),
        "b2": jax.random.uniform(k4, (C, 1), jnp.float32, -scale, scale),
    }


@functools.partial(jax.jit, static_argnames=("compute_dtype",))
def residual_block_forward(x_nchw, params, compute_dtype=jnp.float32):
    """Forward pass matching the PyTorch module. Input/output are NCHW f32."""
    N, C, H, W = x_nchw.shape
    Hp, Wp = H + 2, W + 2
    P = Hp * Wp

    # Reflection-pad the input once and flatten spatial dims onto the lane axis.
    xpad = jnp.pad(x_nchw.astype(jnp.float32),
                   ((0, 0), (0, 0), (1, 1), (1, 1)), mode="reflect")
    x_flat = xpad.reshape(N, C, P)
    masks = _make_masks(H, W)

    w1 = params["w1"].astype(compute_dtype)
    w2 = params["w2"].astype(compute_dtype)
    b1 = params["b1"].astype(jnp.float32)
    b2 = params["b2"].astype(jnp.float32)

    kernel = _make_resblock_kernel(C, Hp, Wp, H * W, compute_dtype)

    out_flat = pl.pallas_call(
        kernel,
        out_shape=jax.ShapeDtypeStruct((N, C, P), jnp.float32),
        grid_spec=pltpu.PrefetchScalarGridSpec(
            num_scalar_prefetch=0,
            grid=(N,),
            in_specs=[
                pl.BlockSpec((8, P), lambda n: (0, 0)),        # masks (constant)
                pl.BlockSpec((1, C, P), lambda n: (n, 0, 0)),  # padded input
                pl.BlockSpec((C, 9 * C), lambda n: (0, 0)),    # w1
                pl.BlockSpec((C, 1), lambda n: (0, 0)),        # b1
                pl.BlockSpec((C, 9 * C), lambda n: (0, 0)),    # w2
                pl.BlockSpec((C, 1), lambda n: (0, 0)),        # b2
            ],
            out_specs=pl.BlockSpec((1, C, P), lambda n: (n, 0, 0)),
        ),
        compiler_params=pltpu.CompilerParams(
            dimension_semantics=("parallel",)),
    )(masks, x_flat, w1, b1, w2, b2)

    # Drop the padding ring (plain XLA slice; kernel stores stayed lane-dense).
    return out_flat.reshape(N, C, Hp, Wp)[:, :, 1:-1, 1:-1]


def _reference_forward(x_nchw, params):
    """Pure-JAX reference for correctness checking."""
    x = jnp.transpose(x_nchw, (0, 2, 3, 1))  # NHWC
    C = x.shape[-1]

    def conv_in(xp, w_eff, b):
        w4 = w_eff.reshape(C, 3, 3, C).transpose(1, 2, 3, 0)   # HWIO
        y = lax.conv_general_dilated(
            xp, w4, (1, 1), "VALID",
            dimension_numbers=("NHWC", "HWIO", "NHWC")) + b[:, 0]
        mean = y.mean(axis=(1, 2), keepdims=True)
        var = ((y - mean) ** 2).mean(axis=(1, 2), keepdims=True)
        return (y - mean) / jnp.sqrt(var + EPS)

    xpad = jnp.pad(x, ((0, 0), (1, 1), (1, 1), (0, 0)), mode="reflect")
    h = jnp.maximum(conv_in(xpad, params["w1"], params["b1"]), 0.0)
    hpad = jnp.pad(h, ((0, 0), (1, 1), (1, 1), (0, 0)), mode="reflect")
    out = x + conv_in(hpad, params["w2"], params["b2"])
    return jnp.transpose(out, (0, 3, 1, 2))


if __name__ == "__main__":
    N, C, H, W = 2, 4, 16, 16
    key = jax.random.PRNGKey(0)
    k_x, k_p = jax.random.split(key)
    x = jax.random.normal(k_x, (N, C, H, W), jnp.float32)
    params = init_params(k_p, C)

    ref = _reference_forward(x, params)

    # f32 MXU operands: strict check against the f32 reference.
    out = jax.block_until_ready(residual_block_forward(x, params))
    assert out.shape == (N, C, H, W)
    assert jnp.allclose(out, ref, atol=2e-4, rtol=2e-4), "f32 mismatch vs reference"

    # bf16 MXU operands (f32 accumulation + f32 norm/residual): the fast path
    # for v5e/v6e/v7x; tolerance reflects bf16 operand rounding through two
    # conv + InstanceNorm stages.
    out_bf16 = jax.block_until_ready(
        residual_block_forward(x, params, compute_dtype=jnp.bfloat16))
    assert out_bf16.shape == (N, C, H, W)
    assert jnp.allclose(out_bf16, ref, atol=1.5e-1, rtol=1.5e-1), \
        "bf16 mismatch vs reference"

    print("KERNEL_OK")
</pallas_src>

<mosaic_0001>
module attributes {stable_mosaic.version = 11 : i64} {
  func.func @kernel(%arg0: i32, %arg1: memref<8x324xf32, #tpu.memory_space<vmem>>, %arg2: memref<1x4x324xf32, #tpu.memory_space<vmem>>, %arg3: memref<4x36xf32, #tpu.memory_space<vmem>>, %arg4: memref<4x1xf32, #tpu.memory_space<vmem>>, %arg5: memref<4x36xf32, #tpu.memory_space<vmem>>, %arg6: memref<4x1xf32, #tpu.memory_space<vmem>>, %arg7: memref<1x4x324xf32, #tpu.memory_space<vmem>>) attributes {dimension_semantics = [#tpu.dimension_semantics<parallel>], iteration_bounds = array<i64: 2>, scalar_prefetch = 0 : i64, scratch_operands = 0 : i64, tpu.core_type = #tpu.core_type<tc>, window_params = [{pipeline_mode = #tpu.pipeline_mode<synchronous>, transform_indices = @transform_0, window_bounds = array<i64: 8, 324>}, {transform_indices = @transform_1, window_bounds = array<i64: 1, 4, 324>}, {pipeline_mode = #tpu.pipeline_mode<synchronous>, transform_indices = @transform_2, window_bounds = array<i64: 4, 36>}, {pipeline_mode = #tpu.pipeline_mode<synchronous>, transform_indices = @transform_3, window_bounds = array<i64: 4, 1>}, {pipeline_mode = #tpu.pipeline_mode<synchronous>, transform_indices = @transform_4, window_bounds = array<i64: 4, 36>}, {pipeline_mode = #tpu.pipeline_mode<synchronous>, transform_indices = @transform_5, window_bounds = array<i64: 4, 1>}, {transform_indices = @transform_6, window_bounds = array<i64: 1, 4, 324>}]} {
    %c0 = arith.constant 0 : index
    %c0_0 = arith.constant 0 : index
    %c0_1 = arith.constant 0 : index
    %0 = vector.load %arg2[%c0, %c0_0, %c0_1] : memref<1x4x324xf32, #tpu.memory_space<vmem>>, vector<1x4x324xf32>
    %1 = vector.shape_cast %0 : vector<1x4x324xf32> to vector<4x324xf32>
    %c0_2 = arith.constant 0 : index
    %c0_3 = arith.constant 0 : index
    %2 = vector.load %arg1[%c0_2, %c0_3] : memref<8x324xf32, #tpu.memory_space<vmem>>, vector<1x324xf32>
    %c1 = arith.constant 1 : index
    %c0_4 = arith.constant 0 : index
    %3 = vector.load %arg1[%c1, %c0_4] : memref<8x324xf32, #tpu.memory_space<vmem>>, vector<1x324xf32>
    %cst = arith.constant 5.000000e-01 : f32
    %4 = vector.broadcast %cst : f32 to vector<1x324xf32>
    %5 = arith.cmpf ogt, %3, %4 : vector<1x324xf32>
    %c2 = arith.constant 2 : index
    %c0_5 = arith.constant 0 : index
    %6 = vector.load %arg1[%c2, %c0_5] : memref<8x324xf32, #tpu.memory_space<vmem>>, vector<1x324xf32>
    %cst_6 = arith.constant 5.000000e-01 : f32
    %7 = vector.broadcast %cst_6 : f32 to vector<1x324xf32>
    %8 = arith.cmpf ogt, %6, %7 : vector<1x324xf32>
    %c3 = arith.constant 3 : index
    %c0_7 = arith.constant 0 : index
    %9 = vector.load %arg1[%c3, %c0_7] : memref<8x324xf32, #tpu.memory_space<vmem>>, vector<1x324xf32>
    %cst_8 = arith.constant 5.000000e-01 : f32
    %10 = vector.broadcast %cst_8 : f32 to vector<1x324xf32>
    %11 = arith.cmpf ogt, %9, %10 : vector<1x324xf32>
    %c4 = arith.constant 4 : index
    %c0_9 = arith.constant 0 : index
    %12 = vector.load %arg1[%c4, %c0_9] : memref<8x324xf32, #tpu.memory_space<vmem>>, vector<1x324xf32>
    %cst_10 = arith.constant 5.000000e-01 : f32
    %13 = vector.broadcast %cst_10 : f32 to vector<1x324xf32>
    %14 = arith.cmpf ogt, %12, %13 : vector<1x324xf32>
    %c0_11 = arith.constant 0 : index
    %c0_12 = arith.constant 0 : index
    %15 = vector.load %arg3[%c0_11, %c0_12] : memref<4x36xf32, #tpu.memory_space<vmem>>, vector<4x36xf32>
    %c0_13 = arith.constant 0 : index
    %c0_14 = arith.constant 0 : index
    %16 = vector.load %arg4[%c0_13, %c0_14] : memref<4x1xf32, #tpu.memory_space<vmem>>, vector<4x1xf32>
    %cst_15 = arith.constant 0.000000e+00 : f32
    %17 = vector.broadcast %cst_15 : f32 to vector<4x19xf32>
    %18 = vector.extract_strided_slice %1 {offsets = [0, 0], sizes = [4, 305], strides = [1, 1]} : vector<4x324xf32> to vector<4x305xf32>
    %19 = tpu.concatenate %17, %18 in 1 : vector<4x19xf32>, vector<4x305xf32> -> vector<4x324xf32>
    %cst_16 = arith.constant 0.000000e+00 : f32
    %20 = vector.broadcast %cst_16 : f32 to vector<4x18xf32>
    %21 = vector.extract_strided_slice %1 {offsets = [0, 0], sizes = [4, 306], strides = [1, 1]} : vector<4x324xf32> to vector<4x306xf32>
    %22 = tpu.concatenate %20, %21 in 1 : vector<4x18xf32>, vector<4x306xf32> -> vector<4x324xf32>
    %cst_17 = arith.constant 0.000000e+00 : f32
    %23 = vector.broadcast %cst_17 : f32 to vector<4x17xf32>
    %24 = vector.extract_strided_slice %1 {offsets = [0, 0], sizes = [4, 307], strides = [1, 1]} : vector<4x324xf32> to vector<4x307xf32>
    %25 = tpu.concatenate %23, %24 in 1 : vector<4x17xf32>, vector<4x307xf32> -> vector<4x324xf32>
    %cst_18 = arith.constant 0.000000e+00 : f32
    %26 = vector.broadcast %cst_18 : f32 to vector<4x1xf32>
    %27 = vector.extract_strided_slice %1 {offsets = [0, 0], sizes = [4, 323], strides = [1, 1]} : vector<4x324xf32> to vector<4x323xf32>
    %28 = tpu.concatenate %26, %27 in 1 : vector<4x1xf32>, vector<4x323xf32> -> vector<4x324xf32>
    %cst_19 = arith.constant 0.000000e+00 : f32
    %29 = vector.broadcast %cst_19 : f32 to vector<4x1xf32>
    %30 = vector.extract_strided_slice %1 {offsets = [0, 1], sizes = [4, 323], strides = [1, 1]} : vector<4x324xf32> to vector<4x323xf32>
    %31 = tpu.concatenate %30, %29 in 1 : vector<4x323xf32>, vector<4x1xf32> -> vector<4x324xf32>
    %cst_20 = arith.constant 0.000000e+00 : f32
    %32 = vector.broadcast %cst_20 : f32 to vector<4x17xf32>
    %33 = vector.extract_strided_slice %1 {offsets = [0, 17], sizes = [4, 307], strides = [1, 1]} : vector<4x324xf32> to vector<4x307xf32>
    %34 = tpu.concatenate %33, %32 in 1 : vector<4x307xf32>, vector<4x17xf32> -> vector<4x324xf32>
    %cst_21 = arith.constant 0.000000e+00 : f32
    %35 = vector.broadcast %cst_21 : f32 to vector<4x18xf32>
    %36 = vector.extract_strided_slice %1 {offsets = [0, 18], sizes = [4, 306], strides = [1, 1]} : vector<4x324xf32> to vector<4x306xf32>
    %37 = tpu.concatenate %36, %35 in 1 : vector<4x306xf32>, vector<4x18xf32> -> vector<4x324xf32>
    %cst_22 = arith.constant 0.000000e+00 : f32
    %38 = vector.broadcast %cst_22 : f32 to vector<4x19xf32>
    %39 = vector.extract_strided_slice %1 {offsets = [0, 19], sizes = [4, 305], strides = [1, 1]} : vector<4x324xf32> to vector<4x305xf32>
    %40 = tpu.concatenate %39, %38 in 1 : vector<4x305xf32>, vector<4x19xf32> -> vector<4x324xf32>
    %41 = tpu.concatenate %19, %22, %25, %28, %1, %31, %34, %37, %40 in 0 : vector<4x324xf32>, vector<4x324xf32>, vector<4x324xf32>, vector<4x324xf32>, vector<4x324xf32>, vector<4x324xf32>, vector<4x324xf32>, vector<4x324xf32>, vector<4x324xf32> -> vector<36x324xf32>
    %cst_23 = arith.constant dense<0.000000e+00> : vector<4x324xf32>
    %42 = tpu.matmul %15, %41, %cst_23 {dimension_numbers = #tpu.dot_dimension_numbers<[1], [0], [0], [1], [0, 0, 1, 1], [], []>} : vector<4x36xf32>, vector<36x324xf32>, vector<4x324xf32> -> vector<4x324xf32>
    %43 = vector.broadcast %16 : vector<4x1xf32> to vector<4x324xf32>
    %44 = arith.addf %42, %43 : vector<4x324xf32>
    %45 = vector.broadcast %2 : vector<1x324xf32> to vector<4x324xf32>
    %46 = arith.mulf %44, %45 : vector<4x324xf32>
    %cst_24 = arith.constant dense<0.000000e+00> : vector<4xf32>
    %47 = vector.multi_reduction <add>, %46, %cst_24 [1] : vector<4x324xf32> to vector<4xf32>
    %48 = vector.shape_cast %47 : vector<4xf32> to vector<4x1xf32>
    %49 = arith.mulf %44, %44 : vector<4x324xf32>
    %50 = vector.broadcast %2 : vector<1x324xf32> to vector<4x324xf32>
    %51 = arith.mulf %49, %50 : vector<4x324xf32>
    %cst_25 = arith.constant dense<0.000000e+00> : vector<4xf32>
    %52 = vector.multi_reduction <add>, %51, %cst_25 [1] : vector<4x324xf32> to vector<4xf32>
    %53 = vector.shape_cast %52 : vector<4xf32> to vector<4x1xf32>
    %cst_26 = arith.constant 3.906250e-03 : f32
    %54 = vector.broadcast %cst_26 : f32 to vector<4x1xf32>
    %55 = arith.mulf %48, %54 : vector<4x1xf32>
    %cst_27 = arith.constant 3.906250e-03 : f32
    %56 = vector.broadcast %cst_27 : f32 to vector<4x1xf32>
    %57 = arith.mulf %53, %56 : vector<4x1xf32>
    %58 = arith.mulf %55, %55 : vector<4x1xf32>
    %59 = arith.subf %57, %58 : vector<4x1xf32>
    %60 = vector.broadcast %55 : vector<4x1xf32> to vector<4x324xf32>
    %61 = arith.subf %44, %60 : vector<4x324xf32>
    %cst_28 = arith.constant 9.99999974E-6 : f32
    %62 = vector.broadcast %cst_28 : f32 to vector<4x1xf32>
    %63 = arith.addf %59, %62 : vector<4x1xf32>
    %64 = math.rsqrt %63 : vector<4x1xf32>
    %65 = vector.broadcast %64 : vector<4x1xf32> to vector<4x324xf32>
    %66 = arith.mulf %61, %65 : vector<4x324xf32>
    %cst_29 = arith.constant 0.000000e+00 : f32
    %67 = vector.broadcast %cst_29 : f32 to vector<4x324xf32>
    %68 = arith.maximumf %66, %67 : vector<4x324xf32>
    %cst_30 = arith.constant 0.000000e+00 : f32
    %69 = vector.broadcast %cst_30 : f32 to vector<4x2xf32>
    %70 = vector.extract_strided_slice %68 {offsets = [0, 2], sizes = [4, 322], strides = [1, 1]} : vector<4x324xf32> to vector<4x322xf32>
    %71 = tpu.concatenate %70, %69 in 1 : vector<4x322xf32>, vector<4x2xf32> -> vector<4x324xf32>
    %72 = vector.shape_cast %5 : vector<1x324xi1> to vector<1x324xi1>
    %73 = vector.broadcast %72 : vector<1x324xi1> to vector<4x324xi1>
    %74 = arith.select %73, %71, %68 : vector<4x324xi1>, vector<4x324xf32>
    %cst_31 = arith.constant 0.000000e+00 : f32
    %75 = vector.broadcast %cst_31 : f32 to vector<4x2xf32>
    %76 = vector.extract_strided_slice %68 {offsets = [0, 0], sizes = [4, 322], strides = [1, 1]} : vector<4x324xf32> to vector<4x322xf32>
    %77 = tpu.concatenate %75, %76 in 1 : vector<4x2xf32>, vector<4x322xf32> -> vector<4x324xf32>
    %78 = vector.shape_cast %8 : vector<1x324xi1> to vector<1x324xi1>
    %79 = vector.broadcast %78 : vector<1x324xi1> to vector<4x324xi1>
    %80 = arith.select %79, %77, %74 : vector<4x324xi1>, vector<4x324xf32>
    %cst_32 = arith.constant 0.000000e+00 : f32
    %81 = vector.broadcast %cst_32 : f32 to vector<4x36xf32>
    %82 = vector.extract_strided_slice %80 {offsets = [0, 36], sizes = [4, 288], strides = [1, 1]} : vector<4x324xf32> to vector<4x288xf32>
    %83 = tpu.concatenate %82, %81 in 1 : vector<4x288xf32>, vector<4x36xf32> -> vector<4x324xf32>
    %84 = vector.shape_cast %11 : vector<1x324xi1> to vector<1x324xi1>
    %85 = vector.broadcast %84 : vector<1x324xi1> to vector<4x324xi1>
    %86 = arith.select %85, %83, %80 : vector<4x324xi1>, vector<4x324xf32>
    %cst_33 = arith.constant 0.000000e+00 : f32
    %87 = vector.broadcast %cst_33 : f32 to vector<4x36xf32>
    %88 = vector.extract_strided_slice %86 {offsets = [0, 0], sizes = [4, 288], strides = [1, 1]} : vector<4x324xf32> to vector<4x288xf32>
    %89 = tpu.concatenate %87, %88 in 1 : vector<4x36xf32>, vector<4x288xf32> -> vector<4x324xf32>
    %90 = vector.shape_cast %14 : vector<1x324xi1> to vector<1x324xi1>
    %91 = vector.broadcast %90 : vector<1x324xi1> to vector<4x324xi1>
    %92 = arith.select %91, %89, %86 : vector<4x324xi1>, vector<4x324xf32>
    %c0_34 = arith.constant 0 : index
    %c0_35 = arith.constant 0 : index
    %93 = vector.load %arg5[%c0_34, %c0_35] : memref<4x36xf32, #tpu.memory_space<vmem>>, vector<4x36xf32>
    %c0_36 = arith.constant 0 : index
    %c0_37 = arith.constant 0 : index
    %94 = vector.load %arg6[%c0_36, %c0_37] : memref<4x1xf32, #tpu.memory_space<vmem>>, vector<4x1xf32>
    %cst_38 = arith.constant 0.000000e+00 : f32
    %95 = vector.broadcast %cst_38 : f32 to vector<4x19xf32>
    %96 = vector.extract_strided_slice %92 {offsets = [0, 0], sizes = [4, 305], strides = [1, 1]} : vector<4x324xf32> to vector<4x305xf32>
    %97 = tpu.concatenate %95, %96 in 1 : vector<4x19xf32>, vector<4x305xf32> -> vector<4x324xf32>
    %cst_39 = arith.constant 0.000000e+00 : f32
    %98 = vector.broadcast %cst_39 : f32 to vector<4x18xf32>
    %99 = vector.extract_strided_slice %92 {offsets = [0, 0], sizes = [4, 306], strides = [1, 1]} : vector<4x324xf32> to vector<4x306xf32>
    %100 = tpu.concatenate %98, %99 in 1 : vector<4x18xf32>, vector<4x306xf32> -> vector<4x324xf32>
    %cst_40 = arith.constant 0.000000e+00 : f32
    %101 = vector.broadcast %cst_40 : f32 to vector<4x17xf32>
    %102 = vector.extract_strided_slice %92 {offsets = [0, 0], sizes = [4, 307], strides = [1, 1]} : vector<4x324xf32> to vector<4x307xf32>
    %103 = tpu.concatenate %101, %102 in 1 : vector<4x17xf32>, vector<4x307xf32> -> vector<4x324xf32>
    %cst_41 = arith.constant 0.000000e+00 : f32
    %104 = vector.broadcast %cst_41 : f32 to vector<4x1xf32>
    %105 = vector.extract_strided_slice %92 {offsets = [0, 0], sizes = [4, 323], strides = [1, 1]} : vector<4x324xf32> to vector<4x323xf32>
    %106 = tpu.concatenate %104, %105 in 1 : vector<4x1xf32>, vector<4x323xf32> -> vector<4x324xf32>
    %cst_42 = arith.constant 0.000000e+00 : f32
    %107 = vector.broadcast %cst_42 : f32 to vector<4x1xf32>
    %108 = vector.extract_strided_slice %92 {offsets = [0, 1], sizes = [4, 323], strides = [1, 1]} : vector<4x324xf32> to vector<4x323xf32>
    %109 = tpu.concatenate %108, %107 in 1 : vector<4x323xf32>, vector<4x1xf32> -> vector<4x324xf32>
    %cst_43 = arith.constant 0.000000e+00 : f32
    %110 = vector.broadcast %cst_43 : f32 to vector<4x17xf32>
    %111 = vector.extract_strided_slice %92 {offsets = [0, 17], sizes = [4, 307], strides = [1, 1]} : vector<4x324xf32> to vector<4x307xf32>
    %112 = tpu.concatenate %111, %110 in 1 : vector<4x307xf32>, vector<4x17xf32> -> vector<4x324xf32>
    %cst_44 = arith.constant 0.000000e+00 : f32
    %113 = vector.broadcast %cst_44 : f32 to vector<4x18xf32>
    %114 = vector.extract_strided_slice %92 {offsets = [0, 18], sizes = [4, 306], strides = [1, 1]} : vector<4x324xf32> to vector<4x306xf32>
    %115 = tpu.concatenate %114, %113 in 1 : vector<4x306xf32>, vector<4x18xf32> -> vector<4x324xf32>
    %cst_45 = arith.constant 0.000000e+00 : f32
    %116 = vector.broadcast %cst_45 : f32 to vector<4x19xf32>
    %117 = vector.extract_strided_slice %92 {offsets = [0, 19], sizes = [4, 305], strides = [1, 1]} : vector<4x324xf32> to vector<4x305xf32>
    %118 = tpu.concatenate %117, %116 in 1 : vector<4x305xf32>, vector<4x19xf32> -> vector<4x324xf32>
    %119 = tpu.concatenate %97, %100, %103, %106, %92, %109, %112, %115, %118 in 0 : vector<4x324xf32>, vector<4x324xf32>, vector<4x324xf32>, vector<4x324xf32>, vector<4x324xf32>, vector<4x324xf32>, vector<4x324xf32>, vector<4x324xf32>, vector<4x324xf32> -> vector<36x324xf32>
    %cst_46 = arith.constant dense<0.000000e+00> : vector<4x324xf32>
    %120 = tpu.matmul %93, %119, %cst_46 {dimension_numbers = #tpu.dot_dimension_numbers<[1], [0], [0], [1], [0, 0, 1, 1], [], []>} : vector<4x36xf32>, vector<36x324xf32>, vector<4x324xf32> -> vector<4x324xf32>
    %121 = vector.broadcast %94 : vector<4x1xf32> to vector<4x324xf32>
    %122 = arith.addf %120, %121 : vector<4x324xf32>
    %123 = vector.broadcast %2 : vector<1x324xf32> to vector<4x324xf32>
    %124 = arith.mulf %122, %123 : vector<4x324xf32>
    %cst_47 = arith.constant dense<0.000000e+00> : vector<4xf32>
    %125 = vector.multi_reduction <add>, %124, %cst_47 [1] : vector<4x324xf32> to vector<4xf32>
    %126 = vector.shape_cast %125 : vector<4xf32> to vector<4x1xf32>
    %127 = arith.mulf %122, %122 : vector<4x324xf32>
    %128 = vector.broadcast %2 : vector<1x324xf32> to vector<4x324xf32>
    %129 = arith.mulf %127, %128 : vector<4x324xf32>
    %cst_48 = arith.constant dense<0.000000e+00> : vector<4xf32>
    %130 = vector.multi_reduction <add>, %129, %cst_48 [1] : vector<4x324xf32> to vector<4xf32>
    %131 = vector.shape_cast %130 : vector<4xf32> to vector<4x1xf32>
    %cst_49 = arith.constant 3.906250e-03 : f32
    %132 = vector.broadcast %cst_49 : f32 to vector<4x1xf32>
    %133 = arith.mulf %126, %132 : vector<4x1xf32>
    %cst_50 = arith.constant 3.906250e-03 : f32
    %134 = vector.broadcast %cst_50 : f32 to vector<4x1xf32>
    %135 = arith.mulf %131, %134 : vector<4x1xf32>
    %136 = arith.mulf %133, %133 : vector<4x1xf32>
    %137 = arith.subf %135, %136 : vector<4x1xf32>
    %138 = vector.broadcast %133 : vector<4x1xf32> to vector<4x324xf32>
    %139 = arith.subf %122, %138 : vector<4x324xf32>
    %cst_51 = arith.constant 9.99999974E-6 : f32
    %140 = vector.broadcast %cst_51 : f32 to vector<4x1xf32>
    %141 = arith.addf %137, %140 : vector<4x1xf32>
    %142 = math.rsqrt %141 : vector<4x1xf32>
    %143 = vector.broadcast %142 : vector<4x1xf32> to vector<4x324xf32>
    %144 = arith.mulf %139, %143 : vector<4x324xf32>
    %145 = arith.addf %1, %144 : vector<4x324xf32>
    %c0_52 = arith.constant 0 : index
    %c0_53 = arith.constant 0 : index
    %c0_54 = arith.constant 0 : index
    %146 = vector.load %arg7[%c0_52, %c0_53, %c0_54] : memref<1x4x324xf32, #tpu.memory_space<vmem>>, vector<1x4x324xf32>
    %147 = vector.shape_cast %146 : vector<1x4x324xf32> to vector<4x324xf32>
    %148 = vector.shape_cast %145 : vector<4x324xf32> to vector<1x4x324xf32>
    tpu.vector_store %arg7[%c0_52, %c0_53, %c0_54], %148 {strides = array<i32>} : memref<1x4x324xf32, #tpu.memory_space<vmem>>, vector<1x4x324xf32>,
    return
  }
  func.func @transform_0(%arg0: i32) -> (i32, i32) {
    %c0_i32 = arith.constant 0 : i32
    %c0_i32_0 = arith.constant 0 : i32
    %c0_i32_1 = arith.constant 0 : i32
    return %c0_i32, %c0_i32_0 : i32, i32
  }
  func.func @transform_1(%arg0: i32) -> (i32, i32, i32) {
    %c0_i32 = arith.constant 0 : i32
    %c0_i32_0 = arith.constant 0 : i32
    %c0_i32_1 = arith.constant 0 : i32
    return %arg0, %c0_i32, %c0_i32_0 : i32, i32, i32
  }
  func.func @transform_2(%arg0: i32) -> (i32, i32) {
    %c0_i32 = arith.constant 0 : i32
    %c0_i32_0 = arith.constant 0 : i32
    %c0_i32_1 = arith.constant 0 : i32
    return %c0_i32, %c0_i32_0 : i32, i32
  }
  func.func @transform_3(%arg0: i32) -> (i32, i32) {
    %c0_i32 = arith.constant 0 : i32
    %c0_i32_0 = arith.constant 0 : i32
    %c0_i32_1 = arith.constant 0 : i32
    return %c0_i32, %c0_i32_0 : i32, i32
  }
  func.func @transform_4(%arg0: i32) -> (i32, i32) {
    %c0_i32 = arith.constant 0 : i32
    %c0_i32_0 = arith.constant 0 : i32
    %c0_i32_1 = arith.constant 0 : i32
    return %c0_i32, %c0_i32_0 : i32, i32
  }
  func.func @transform_5(%arg0: i32) -> (i32, i32) {
    %c0_i32 = arith.constant 0 : i32
    %c0_i32_0 = arith.constant 0 : i32
    %c0_i32_1 = arith.constant 0 : i32
    return %c0_i32, %c0_i32_0 : i32, i32
  }
  func.func @transform_6(%arg0: i32) -> (i32, i32, i32) {
    %c0_i32 = arith.constant 0 : i32
    %c0_i32_0 = arith.constant 0 : i32
    %c0_i32_1 = arith.constant 0 : i32
    return %arg0, %c0_i32, %c0_i32_0 : i32, i32, i32
  }
}

</mosaic_0001>

<bundles_post_ra>
// kernel: residual_block_forward.1
= control target key start
LH: loop header
LB: loop body
LE: loop exit
PB: predicated region body
PF: predicated region fallthrough
CT: control target
= control target key end

     0   :  { %s1193_s21 = smov 0   ;;  %s1505_s0 = inlined_call_operand.vmem [shape: f32[8,324], index: 0, kind: input, shape index: {}]   ;;  %s1506_s1 = inlined_call_operand.vmem [shape: f32[2,4,324], index: 1, kind: input, shape index: {}]   ;;  %s1507_s2 = inlined_call_operand.vmem [shape: f32[4,36], index: 2, kind: input, shape index: {}]   ;;  %s1508_s3 = inlined_call_operand.vmem [shape: f32[4,1], index: 3, kind: input, shape index: {}]   ;;  %s1509_s4 = inlined_call_operand.vmem [shape: f32[4,36], index: 4, kind: input, shape index: {}]   ;;  %s1510_s5 = inlined_call_operand.vmem [shape: f32[4,1], index: 5, kind: input, shape index: {}]   ;;  %s1511_s6 = inlined_call_operand.vmem [shape: f32[2,4,324], index: 6, kind: output, shape index: {}]  }
   0x1 LB: > { %s1014_s22 = sadd.s32 4294967295, %s1143_s21   ;;  %p1018_p0 = scmp.ge.s32.totalorder %s1143_s21, 1  ;;  %s1143_s21 = sphi %s1193_s21, %s16_s21  }
   0x2   : > { %p212_p1 = scmp.lt.s32.totalorder %s1143_s21, 3 }
   0x4   : > { %p213_p2 = pnand %p1018_p0, %p212_p1 }
   0x5   : > { %p242_p3 = scmp.lt.s32.totalorder (!%p213_p2), %s1014_s22, 1  ;;  %s1145_s27 = smov (!%p213_p2), 19  }
   0x6   : > { %216 = sbr.rel (%p213_p2) target bundleno = 1304 (0x518), region = 44  ;;  %s1146_s28 = smov (!%p213_p2), 18  }
   0x7   : > { %s1147_s29 = smov (!%p213_p2), 17   ;;  %s1148_s30 = smov (!%p213_p2), 1  }
   0x8   : > { %s1149_s7 = smov (!%p213_p2), 127   ;;  %s1150_s8 = smov (!%p213_p2), 111  }
   0x9   : > { %s1151_s9 = smov (!%p213_p2), 110   ;;  %s1152_s10 = smov (!%p213_p2), 109  }
   0xa   : > { %s1154_s17 = smov (!%p213_p2), 126   ;;  %s1155_s18 = smov (!%p213_p2), 2  }
   0xb   : > { %s1533_s22 = smov (!%p242_p3, %s1014_s22), 1  ;;  %v268_v41 = vld [vmem:[%s1508_s3] sm:$0xf]  ;;  %v1153_v42 = vmov 0   ;;  %vm1515_vm0 = vcmask 408576   ;;  %vm393_vm1 = vcmask 900096  }
   0xc   : > { %s1039_s23 = smul.u32 12, %s1533_s22  ;;  %1096 = vset.pattern.permute.xlu2 %v1153_v42  ;;  %1132 = vset.pattern.permute.xlu0 %v1153_v42  ;;  %vm338_vm2 = vcmask 7168   ;;  %vm1514_vm3 = vcmask 547840   ;;  %vm355_vm4 = vcmask 1039360   ;;  %vm1518_vm5 = vcmask 146432   ;;  %s1157_s13 = smov 36  }
   0xd   : > { %vm454_vm6 = vcmask 1043456   ;;  %vm373_vm7 = vcmask 908288   ;;  %vm1512_vm8 = vcmask 416768   ;;  %vm411_vm9 = vcmask 891904  }
   0xe   : > { %s246_s26 = scalar_lea.vmem %s1506_s1, %s1039_s23  ;;  %vm1516_vm10 = vcmask 400384   ;;  %vm319_vm11 = vcmask 138240   ;;  %vm1517_vm12 = vcmask 154624   ;;  %vm472_vm13 = vcmask 293888  }
   0xf   : > { %v1209_v0 = vld [vmem:[%s246_s26] sm:$0xff]  ;;  %v1211_v1 = vld [vmem:[%s246_s26 + $0x8] sm:$0xf]  ;;  %vm1513_vm14 = vcmask 551936   ;;  %s1156_s26 = smov 92  }
  0x10   : > { %271 = vst [vmem:[#allocation1] ss:$2 sm:$0xff] %v1209_v0 }
  0x11   : > { %273 = vst [vmem:[#allocation1 + $0x10] ss:$2 sm:$0xff] %v1211_v1 }
  0x17   : > { %v1215_v2 = vld.sshfl [vmem:[#allocation1] sm:$0xff pattern:$0x75316420]  ;;  %v275_v3 = vld.sshfl [vmem:[#allocation1 + $0x8] sm:$0xff pattern:$0x75316420] }
  0x18   : > { %290 = vst [vmem:[#allocation1] ss:$2 sm:$0xff] %v1209_v0  ;;  %v276_v4 = vld.sshfl [vmem:[#allocation1 + $0x10] sm:$0xff pattern:$0x75316420] }
  0x19   : > { %292 = vst [vmem:[#allocation1 + $0x10] ss:$2 sm:$0xff] %v1211_v1  ;;  %v1061_v5 = vpack.i.bf16 %v276_v4, %v275_v3 }
  0x1b   : > { %1062 = vrot.lane.b32.xlu0 %v1061_v5, %s1145_s27 }
  0x1f   : > { %v293_v6 = vld.sshfl [vmem:[#allocation1] sm:$0xff pattern:$0x75316420]  ;;  %v294_v7 = vld.sshfl [vmem:[#allocation1 + $0x8] sm:$0xff pattern:$0x75316420] }
  0x20   : > { %307 = vst [vmem:[#allocation1] ss:$2 sm:$0xff] %v1209_v0  ;;  %v295_v8 = vld.sshfl [vmem:[#allocation1 + $0x10] sm:$0xff pattern:$0x75316420] }
  0x21   : > { %309 = vst [vmem:[#allocation1 + $0x10] ss:$2 sm:$0xff] %v1211_v1  ;;  %v1066_v9 = vpack.i.bf16 %v295_v8, %v294_v7 }
  0x23   : > { %1067 = vrot.lane.b32.xlu2 %v1066_v9, %s1146_s28 }
  0x27   : > { %v310_v10 = vld.sshfl [vmem:[#allocation1] sm:$0xff pattern:$0x75316420]  ;;  %v311_v11 = vld.sshfl [vmem:[#allocation1 + $0x8] sm:$0xff pattern:$0x75316420] }
  0x28   : > { %326 = vst [vmem:[#allocation1] ss:$2 sm:$0xff] %v1209_v0  ;;  %v312_v12 = vld.sshfl [vmem:[#allocation1 + $0x10] sm:$0xff pattern:$0x75316420] }
  0x29   : > { %328 = vst [vmem:[#allocation1 + $0x10] ss:$2 sm:$0xff] %v1211_v1  ;;  %v1071_v13 = vpack.i.bf16 %v312_v12, %v311_v11 }
  0x2b   : > { %1072 = vrot.lane.b32.xlu0 %v1071_v13, %s1147_s29 }
  0x2f   : > { %v329_v14 = vld.sshfl [vmem:[#allocation1] sm:$0xff pattern:$0x75316420]  ;;  %v330_v15 = vld.sshfl [vmem:[#allocation1 + $0x8] sm:$0xff pattern:$0x75316420] }
  0x30   : > { %332 = vrot.lane.b32.xlu1 %v329_v14, %s1148_s30  ;;  %343 = vst [vmem:[#allocation1] ss:$2 sm:$0xff] %v1209_v0  ;;  %v331_v16 = vld.sshfl [vmem:[#allocation1 + $0x10] sm:$0xff pattern:$0x75316420] }
  0x31   : > { %345 = vst [vmem:[#allocation1 + $0x10] ss:$2 sm:$0xff] %v1211_v1  ;;  %v1076_v17 = vpack.i.bf16 %v331_v16, %v330_v15 }
  0x33   : > { %1077 = vrot.lane.b32.xlu2 %v1076_v17, %s1148_s30 }
  0x37   : > { %v346_v18 = vld.sshfl [vmem:[#allocation1] sm:$0xff pattern:$0x75316420]  ;;  %v347_v19 = vld.sshfl [vmem:[#allocation1 + $0x8] sm:$0xff pattern:$0x75316420] }
  0x38   : > { %v348_v20 = vld.sshfl [vmem:[#allocation1 + $0x10] sm:$0xff pattern:$0x75316420]  ;;  %361 = vst [vmem:[#allocation1] ss:$2 sm:$0xff] %v1209_v0 }
  0x39   : > { %363 = vst [vmem:[#allocation1 + $0x10] ss:$2 sm:$0xff] %v1211_v1  ;;  %v1081_v21 = vpack.i.bf16 %v346_v18, %v348_v20 }
  0x3b   : > { %1082 = vrot.lane.b32.xlu1 %v1081_v21, %s1149_s7 }
  0x3f   : > { %v364_v22 = vld.sshfl [vmem:[#allocation1] sm:$0xff pattern:$0x75316420]  ;;  %v365_v23 = vld.sshfl [vmem:[#allocation1 + $0x8] sm:$0xff pattern:$0x75316420] }
  0x40   : > { %v366_v24 = vld.sshfl [vmem:[#allocation1 + $0x10] sm:$0xff pattern:$0x75316420]  ;;  %381 = vst [vmem:[#allocation1] ss:$2 sm:$0xff] %v1209_v0  ;;  %369 = vrot.lane.b32.xlu2 %v365_v23, %s1150_s8 }
  0x41   : > { %383 = vst [vmem:[#allocation1 + $0x10] ss:$2 sm:$0xff] %v1211_v1  ;;  %v1086_v25 = vpack.i.bf16 %v364_v22, %v366_v24 }
  0x43   : > { %351 = vrot.lane.b32.xlu1 %v347_v19, %s1149_s7 }
  0x47   : > { %v384_v26 = vld.sshfl [vmem:[#allocation1] sm:$0xff pattern:$0x75316420]  ;;  %v385_v27 = vld.sshfl [vmem:[#allocation1 + $0x8] sm:$0xff pattern:$0x75316420] }
  0x48   : > { %v386_v28 = vld.sshfl [vmem:[#allocation1 + $0x10] sm:$0xff pattern:$0x75316420]  ;;  %399 = vst [vmem:[#allocation1] ss:$2 sm:$0xff] %v1209_v0  ;;  %389 = vrot.lane.b32.xlu2 %v385_v27, %s1151_s9 }
  0x49   : > { %401 = vst [vmem:[#allocation1 + $0x10] ss:$2 sm:$0xff] %v1211_v1  ;;  %v1091_v29 = vpack.i.bf16 %v384_v26, %v386_v28 }
  0x4b   : > { %1087 = vrot.lane.b32.xlu1 %v1086_v25, %s1150_s8  ;;  %1092 = vrot.lane.b32.xlu0 %v1091_v29, %s1151_s9 }
  0x4f   : > { %v403_v30 = vld.sshfl [vmem:[#allocation1 + $0x8] sm:$0xff pattern:$0x75316420]  ;;  %v402_v31 = vld.sshfl [vmem:[#allocation1] sm:$0xff pattern:$0x75316420] }
  0x50   : > { %v404_v32 = vld.sshfl [vmem:[#allocation1 + $0x10] sm:$0xff pattern:$0x75316420]  ;;  %431 = vst [vmem:[#allocation1] ss:$2 sm:$0xff] %v1209_v0  ;;  %296 = vrot.lane.b32.xlu2 %v293_v6, %s1146_s28 }
  0x51   : > { %433 = vst [vmem:[#allocation1 + $0x10] ss:$2 sm:$0xff] %v1211_v1 }
  0x53   : > { %409 = vrot.lane.b32.xlu0 %v404_v32, %s1152_s10  ;;  %407 = vrot.lane.b32.xlu1 %v403_v30, %s1152_s10  ;;  %v267_v30 = vld [vmem:[%s1507_s2] sm:$0xf] }
  0x57   : > { %v435_v12 = vld.sshfl [vmem:[#allocation1 + $0x8] sm:$0xff pattern:$0x75316420] }
  0x58   : > { %469 = vperm.xlu2 %1096, %v268_v41   ;;  %v436_v13 = vld.sshfl [vmem:[#allocation1 + $0x10] sm:$0xff pattern:$0x75316420] }
  0x5b   : > { %277 = vrot.lane.b32.xlu1 %v1215_v2, %s1145_s27  ;;  %405 = vrot.lane.b32.xlu0 %v402_v31, %s1152_s10 }
  0x63   : > { %313 = vrot.lane.b32.xlu0 %v310_v10, %s1147_s29 }
  0x7d   : > { %v1251_v33 = vpop.permute.xlu2 %1067 }
  0x7e   : > { %v1070_v47 = vunpack.i.h.bf16 %v1251_v33  ;;  %v1069_v49 = vunpack.i.l.bf16 %v1251_v33 }
  0x80   : > { %v304_v14 = vsel %vm1518_vm5, %v1069_v49, %v1070_v47 }
  0x81   : > { %v420_v23 = vrot.slane %v304_v14, 4 }
  0x8d   : > { %v1255_v35 = vpop.permute.xlu0 %1062  ;;  %v1257_v36 = vpop.permute.xlu2 %1077 }
  0x8e   : > { %v1080_v45 = vunpack.i.h.bf16 %v1257_v36  ;;  %v1079_v50 = vunpack.i.l.bf16 %v1257_v36  ;;  %v1065_v9 = vunpack.i.h.bf16 %v1255_v35  ;;  %v1064_v10 = vunpack.i.l.bf16 %v1255_v35 }
  0x90   : > { %v340_v55 = vsel %vm338_vm2, %v1079_v50, %v1080_v45  ;;  %v285_v25 = vsel %vm1517_vm12, %v1064_v10, %v1065_v9 }
  0x91   : > { %v427_v17 = vrot.slane %v340_v55, 4  ;;  %v457_v35 = vsel %vm454_vm6, %v285_v25, %v420_v23 }
  0x9a   : > { %v1265_v40 = vpop.permute.xlu2 %369 }
  0x9d   : > { %v1261_v38 = vpop.permute.xlu0 %1072 }
  0x9e   : > { %v1075_v58 = vunpack.i.h.bf16 %v1261_v38  ;;  %v1074_v61 = vunpack.i.l.bf16 %v1261_v38 }
  0xa0   : > { %v321_v19 = vsel %vm319_vm11, %v1074_v61, %v1075_v58  ;;  %v254_v58 = vld [vmem:[%s1505_s0] ss:$8 sm:$0x7] }
  0xa1   : > { %v460_v26 = vsel %vm454_vm6, %v321_v19, %v427_v17 }
  0xa2   : > { %v1253_v34 = vpop.permute.xlu1 %332  ;;  %v390_v51 = vpop.permute.xlu2 %389 }
  0xad   : > { %v1259_v37 = vpop.permute.xlu1 %1082 }
  0xae   : > { %v1084_v48 = vunpack.i.l.bf16 %v1259_v37  ;;  %v1085_v11 = vunpack.i.h.bf16 %v1259_v37  ;;  %v297_v37 = vpop.permute.xlu2 %296 }
  0xaf   : > { %v306_v41 = vsel %vm1518_vm5, 0.0, %v297_v37 }
  0xb0   : > { %v360_v56 = vsel %vm1514_vm3, %v1084_v48, 0.0  ;;  %vm631_vm3 = vcmask 15360  }
  0xb1   : > { %v443_v5 = vrot.slane %v360_v56, 4 }
  0xb3   : > { %v463_v22 = vsel %vm454_vm6, %v436_v13, %v443_v5 }
  0xb5   : > { %v1263_v39 = vpop.permute.xlu1 %351 }
  0xb6   : > { %v357_v57 = vsel %vm355_vm4, %v1263_v39, %v1084_v48  ;;  %v356_v24 = vsel %vm355_vm4, %v1085_v11, %v1263_v39  ;;  %v434_v39 = vld.sshfl [vmem:[#allocation1] sm:$0xff pattern:$0x75316420]  ;;  %v303_v48 = vsel %vm1518_vm5, %v297_v37, %v1069_v49  ;;  %v470_v38 = vpop.permute.xlu2 %469 }
  0xb7   : > { %v442_v6 = vrot.slane %v357_v57, 4  ;;  %v441_v31 = vrot.slane %v356_v24, 4  ;;  %v419_v55 = vrot.slane %v303_v48, 4 }
  0xb9   : > { %v462_v21 = vsel %vm454_vm6, %v435_v12, %v442_v6  ;;  %v461_v45 = vsel %vm454_vm6, %v434_v39, %v441_v31 }
  0xbd   : > { %v1272_v43 = vpop.permute.xlu1 %1087  ;;  %v1093_v44 = vpop.permute.xlu0 %1092 }
  0xbe   : > { %v1094_v46 = vunpack.i.l.bf16 %v1093_v44  ;;  %v1089_v52 = vunpack.i.l.bf16 %v1272_v43  ;;  %v1095_v62 = vunpack.i.h.bf16 %v1093_v44  ;;  %v1090_v18 = vunpack.i.h.bf16 %v1272_v43 }
  0xbf   : > { %v342_v44 = vsel %vm338_vm2, 0.0, %v1253_v34 }
  0xc0   : > { %v398_v53 = vsel %vm1515_vm0, %v1094_v46, 0.0  ;;  %v395_v54 = vsel %vm393_vm1, %v390_v51, %v1094_v46  ;;  %v375_v3 = vsel %vm373_vm7, %v1265_v40, %v1089_v52  ;;  %v380_v4 = vsel %vm1512_vm8, %v1089_v52, 0.0 }
  0xc1   : > { %v450_v59 = vrot.slane %v398_v53, 4  ;;  %v449_v60 = vrot.slane %v395_v54, 4  ;;  %v394_v20 = vsel %vm393_vm1, %v1095_v62, %v390_v51  ;;  %v374_v29 = vsel %vm373_vm7, %v1090_v18, %v1265_v40 }
  0xc2   : > { %v448_v27 = vrot.slane %v394_v20, 4  ;;  %v339_v40 = vsel %vm338_vm2, %v1253_v34, %v1079_v50  ;;  %v418_v46 = vrot.slane %v306_v41, 4  ;;  %v425_v52 = vrot.slane %v342_v44, 4 }
  0xc3   : > { %v465_v15 = vsel %vm454_vm6, %v375_v3, %v449_v60  ;;  %v466_v16 = vsel %vm454_vm6, %v380_v4, %v450_v59  ;;  %v426_v53 = vrot.slane %v339_v40, 4  ;;  %v1354_v62 = vperm.slane %v254_v58, 0 }
  0xc4   : > { %v464_v43 = vsel %vm454_vm6, %v374_v29, %v448_v27 }
  0xc5   : > { %v410_v63 = vpop.permute.xlu0 %409  ;;  %v408_v2 = vpop.permute.xlu1 %407 }
  0xc6   : > { %v413_v7 = vsel %vm411_vm9, %v408_v2, %v410_v63  ;;  %v416_v8 = vsel %vm1516_vm10, %v410_v63, 0.0  ;;  %v1356_v63 = vperm.slane %v254_v58, 1 }
  0xc7   : > { %1027 = vmatpush.msk.msra.mxu1 %vm454_vm6, %v413_v7  ;;  %1029 = vmatpush.msk.msra.mxu2 %vm454_vm6, %v416_v8 }
  0xc9   : > { %515 = vmatpush.msra.mxu1 %v465_v15  ;;  %535 = vmatpush.msra.mxu2 %v466_v16 }
  0xcb   : > { %516 = vmatpush.msra.mxu1 %v462_v21  ;;  %536 = vmatpush.msra.mxu2 %v463_v22 }
  0xcd   : > { %537 = vmatpush.msra.mxu2 %v460_v26  ;;  %v406_v28 = vpop.permute.xlu0 %405  ;;  %v278_v47 = vpop.permute.xlu1 %277 }
  0xce   : > { %v412_v32 = vsel %vm411_vm9, %v406_v28, %v408_v2  ;;  %v289_v51 = vsel %vm1517_vm12, 0.0, %v278_v47  ;;  %v284_v54 = vsel %vm1517_vm12, %v278_v47, %v1064_v10 }
  0xcf   : > { %1025 = vmatpush.msk.msra.mxu0 %vm454_vm6, %v412_v32  ;;  %538 = vmatpush.msra.mxu2 %v457_v35  ;;  %v455_v49 = vsel %vm454_vm6, %v289_v51, %v418_v46  ;;  %v456_v57 = vsel %vm454_vm6, %v284_v54, %v419_v55  ;;  %v1022_v55 = vld [vmem:[%s1505_s0 + $0x2] ss:$8 sm:$0x7] }
  0xd0   : > { %1030 = vmatmul.msk.f32.vlgmr.msra.gmra.mxu2 %vm472_vm13, %v267_v30 }
  0xd1   : > { %495 = vmatpush.msra.mxu0 %v464_v43 }
  0xd3   : > { %496 = vmatpush.msra.mxu0 %v461_v45 }
  0xd5   : > { %v314_v36 = vpop.permute.xlu0 %313 }
  0xd6   : > { %v320_v34 = vsel %vm319_vm11, %v314_v36, %v1074_v61  ;;  %v325_v50 = vsel %vm319_vm11, 0.0, %v314_v36  ;;  %v1352_v61 = vperm.slane %v254_v58, 2 }
  0xd7   : > { %v458_v56 = vsel %vm454_vm6, %v325_v50, %v425_v52  ;;  %v459_v33 = vsel %vm454_vm6, %v320_v34, %v426_v53  ;;  %v1021_v50 = vld [vmem:[%s1505_s0 + $0x1] ss:$8 sm:$0x7] }
  0xd8   : > { %497 = vmatpush.msra.mxu0 %v458_v56  ;;  %517 = vmatpush.msra.mxu1 %v459_v33 }
  0xda   : > { %498 = vmatpush.msra.mxu0 %v455_v49  ;;  %518 = vmatpush.msra.mxu1 %v456_v57 }
  0xdb   : > { %1026 = vmatmul.msk.f32.vlgmr.msra.gmra.mxu0 %vm472_vm13, %v267_v30  ;;  %1028 = vmatmul.msk.f32.vlgmr.msra.gmra.mxu1 %vm472_vm13, %v267_v30 }
 0x153   : > { %v540_v59 = vpop.f32.mrf.mxu2 }
 0x154   : > { %v541_v60 = vadd.f32 %v540_v59, %v470_v38 }
 0x156   : > { %v563_v4 = vmul.f32 %v541_v60, %v541_v60  ;;  %v552_v7 = vmul.f32 %v1352_v61, %v541_v60 }
 0x158   : > { %v500_v2 = vpop.f32.mrf.mxu0  ;;  %v520_v3 = vpop.f32.mrf.mxu1  ;;  %v566_v12 = vmul.f32 %v563_v4, %v1352_v61  ;;  %v557_v18 = vsel %vm1513_vm14, %v552_v7, 0.0 }
 0x159   : > { %v501_v5 = vadd.f32 %v500_v2, %v470_v38  ;;  %v521_v6 = vadd.f32 %v520_v3, %v470_v38 }
 0x15a   : > { %v570_v23 = vsel %vm1513_vm14, %v566_v12, 0.0 }
 0x15b   : > { %v550_v8 = vmul.f32 %v1354_v62, %v501_v5  ;;  %v561_v9 = vmul.f32 %v501_v5, %v501_v5  ;;  %v551_v10 = vmul.f32 %v1356_v63, %v521_v6  ;;  %v562_v11 = vmul.f32 %v521_v6, %v521_v6 }
 0x15d   : > { %v553_v13 = vsel %vm454_vm6, %v550_v8, 0.0  ;;  %v554_v14 = vsel %vm454_vm6, %v551_v10, 0.0  ;;  %v564_v15 = vmul.f32 %v561_v9, %v1354_v62  ;;  %v565_v16 = vmul.f32 %v562_v11, %v1356_v63 }
 0x15e   : > { %v555_v17 = vadd.f32 %v554_v14, %v553_v13 }
 0x15f   : > { %v567_v19 = vsel %vm454_vm6, %v564_v15, 0.0  ;;  %v568_v20 = vsel %vm454_vm6, %v565_v16, 0.0 }
 0x160   : > { %v558_v21 = vadd.f32 %v557_v18, %v555_v17  ;;  %v569_v22 = vadd.f32 %v568_v20, %v567_v19  ;;  %v1023_v18 = vld [vmem:[%s1505_s0 + $0x3] ss:$8 sm:$0x7] }
 0x162   : > { %559 = vadd.xlane.f32.xlu0 %v558_v21  ;;  %v571_v24 = vadd.f32 %v570_v23, %v569_v22 }
 0x164   : > { %572 = vadd.xlane.f32.xlu1 %v571_v24 }
 0x1d5   : > { %v560_v25 = vpop.xlane.xlu0 %559 }
 0x1d6   : > { %v574_v26 = vmul.f32 0.00390625, %v560_v25 }
 0x1d7   : > { %v573_v27 = vpop.xlane.xlu1 %572 }
 0x1d8   : > { %v575_v28 = vmul.f32 0.00390625, %v573_v27  ;;  %v576_v29 = vmul.f32 %v574_v26, %v574_v26  ;;  %v578_v40 = vsub.f32 %v501_v5, %v574_v26  ;;  %v579_v47 = vsub.f32 %v521_v6, %v574_v26 }
 0x1d9   : > { %v580_v52 = vsub.f32 %v541_v60, %v574_v26 }
 0x1da   : > { %v577_v30 = vsub.f32 %v575_v28, %v576_v29 }
 0x1dc   : > { %v581_v31 = vadd.f32 1e-05, %v577_v30 }
 0x1de   : > { %1133 = vrsqrt.f32 %v581_v31  ;;  %vm588_vm8 = vweird.f32 %v581_v31 }
 0x1e4   : > { %v1134_v32 = vpop.eup %1133 }
 0x1e5   : > { %v583_v35 = vmul.f32 %v1134_v32, %v581_v31  ;;  %vm589_vm15 = vweird.f32 %v1134_v32 }
 0x1e6   : > { %vm590_vm14 = vmor %vm588_vm8, %vm589_vm15  ;;  %vm257_vm8 = vcmp.gt.f32.partialorder %v1021_v50, 0.5  ;;  %vm607_vm15 = vcmask 1031168  }
 0x1e7   : > { %v584_v37 = vmul.f32 %v1134_v32, %v583_v35  ;;  %v615_v56 = vsel %vm257_vm8, 1, %v1153_v42 }
 0x1e8   : > { %v616_v57 = vperm.slane %v615_v56, 0  ;;  %v617_v4 = vperm.slane %v615_v56, 1  ;;  %v618_v11 = vperm.slane %v615_v56, 2 }
 0x1e9   : > { %v585_v39 = vmul.f32 0.5, %v584_v37 }
 0x1ea   : > { %vm619_vm0 = vcmp.eq.s32.totalorder %v616_v57, 1  ;;  %vm620_vm8 = vcmp.eq.s32.totalorder %v617_v4, 1  ;;  %vm621_vm5 = vcmp.eq.s32.totalorder %v618_v11, 1 }
 0x1eb   : > { %v586_v41 = vsub.f32 1.5, %v585_v39 }
 0x1ed   : > { %v587_v43 = vmul.f32 %v1134_v32, %v586_v41 }
 0x1ef   : > { %v591_v44 = vsel %vm590_vm14, %v1134_v32, %v587_v43  ;;  %vm260_vm14 = vcmp.gt.f32.partialorder %v1022_v55, 0.5  ;;  %v1024_v32 = vld [vmem:[%s1505_s0 + $0x4] ss:$8 sm:$0x7] }
 0x1f0   : > { %v592_v45 = vmul.f32 %v591_v44, %v578_v40  ;;  %v593_v48 = vmul.f32 %v591_v44, %v579_v47  ;;  %v594_v53 = vmul.f32 %v591_v44, %v580_v52  ;;  %v638_v49 = vsel %vm260_vm14, 1, %v1153_v42 }
 0x1f1   : > { %v639_v38 = vperm.slane %v638_v49, 0  ;;  %v640_v5 = vperm.slane %v638_v49, 1  ;;  %vm613_vm14 = vcmask 539648   ;;  %v641_v12 = vperm.slane %v638_v49, 2 }
 0x1f2   : > { %v595_v46 = vmax.f32 %v592_v45, 0.0  ;;  %v596_v51 = vmax.f32 %v593_v48, 0.0  ;;  %v597_v36 = vmax.f32 %v594_v53, 0.0  ;;  %v701_v53 = vld [vmem:[%s1510_s5] sm:$0xf] }
 0x1f3   : > { %vm642_vm10 = vcmp.eq.s32.totalorder %v639_v38, 1  ;;  %vm643_vm12 = vcmp.eq.s32.totalorder %v640_v5, 1 }
 0x1f4   : > { %601 = vrot.lane.b32.xlu2 %v595_v46, %s1154_s17 }
 0x1fc   : > { %603 = vrot.lane.b32.xlu2 %v596_v51, %s1154_s17 }
 0x204   : > { %605 = vrot.lane.b32.xlu2 %v597_v36, %s1154_s17 }
 0x20c   : > { %625 = vrot.lane.b32.xlu2 %v595_v46, %s1155_s18 }
 0x214   : > { %627 = vrot.lane.b32.xlu2 %v596_v51, %s1155_s18 }
 0x21c   : > { %629 = vrot.lane.b32.xlu2 %v597_v36, %s1155_s18 }
 0x24e   : > { %v602_v54 = vpop.permute.xlu2 %601 }
 0x256   : > { %v604_v34 = vpop.permute.xlu2 %603 }
 0x257   : > { %v608_v58 = vsel %vm607_vm15, %v602_v54, %v604_v34 }
 0x258   : > { %v622_v2 = vsel %vm619_vm0, %v608_v58, %v595_v46  ;;  %vm644_vm0 = vcmp.eq.s32.totalorder %v641_v12, 1 }
 0x25e   : > { %v606_v33 = vpop.permute.xlu2 %605 }
 0x25f   : > { %v609_v6 = vsel %vm607_vm15, %v604_v34, %v606_v33  ;;  %v614_v13 = vsel %vm613_vm14, %v606_v33, 0.0  ;;  %vm266_vm14 = vcmp.gt.f32.partialorder %v1024_v32, 0.5 }
 0x260   : > { %v623_v9 = vsel %vm620_vm8, %v609_v6, %v596_v51  ;;  %v624_v16 = vsel %vm621_vm5, %v614_v13, %v597_v36  ;;  %v690_v35 = vsel %vm266_vm14, 1, %v1153_v42  ;;  %vm1523_vm14 = vcmask 547840  }
 0x261   : > { %v691_v37 = vperm.slane %v690_v35, 0  ;;  %v692_v40 = vperm.slane %v690_v35, 1  ;;  %v693_v47 = vperm.slane %v690_v35, 2 }
 0x266   : > { %v626_v59 = vpop.permute.xlu2 %625 }
 0x267   : > { %v637_v60 = vsel %vm631_vm3, 0.0, %v626_v59 }
 0x268   : > { %v645_v3 = vsel %vm642_vm10, %v637_v60, %v622_v2  ;;  %vm263_vm10 = vcmp.gt.f32.partialorder %v1023_v18, 0.5 }
 0x269   : > { %651 = vrot.lane.b32.xlu0 %v645_v3, %s1156_s26  ;;  %v665_v19 = vsel %vm263_vm10, 1, %v1153_v42  ;;  %vm695_vm10 = vcmp.eq.s32.totalorder %v692_v40, 1 }
 0x26a   : > { %v666_v20 = vperm.slane %v665_v19, 0  ;;  %v667_v21 = vperm.slane %v665_v19, 1  ;;  %v668_v29 = vperm.slane %v665_v19, 2 }
 0x26c   : > { %vm669_vm15 = vcmp.eq.s32.totalorder %v666_v20, 1  ;;  %vm670_vm8 = vcmp.eq.s32.totalorder %v667_v21, 1  ;;  %vm671_vm5 = vcmp.eq.s32.totalorder %v668_v29, 1 }
 0x26e   : > { %v628_v7 = vpop.permute.xlu2 %627 }
 0x26f   : > { %v632_v8 = vsel %vm631_vm3, %v626_v59, %v628_v7 }
 0x270   : > { %v646_v10 = vsel %vm643_vm12, %v632_v8, %v623_v9  ;;  %vm657_vm12 = vcmask 752640  }
 0x271   : > { %653 = vrot.lane.b32.xlu1 %v646_v10, %s1156_s26 }
 0x276   : > { %v630_v14 = vpop.permute.xlu2 %629 }
 0x277   : > { %v633_v15 = vsel %vm631_vm3, %v628_v7, %v630_v14  ;;  %vm663_vm3 = vcmask 261120  }
 0x278   : > { %v647_v17 = vsel %vm644_vm0, %v633_v15, %v624_v16  ;;  %vm694_vm0 = vcmp.eq.s32.totalorder %v691_v37, 1 }
 0x279   : > { %655 = vrot.lane.b32.xlu2 %v647_v17, %s1156_s26 }
 0x2d3   : > { %v656_v22 = vpop.permute.xlu2 %655 }
 0x2d4   : > { %v664_v30 = vsel %vm663_vm3, %v656_v22, 0.0  ;;  %vm1521_vm3 = vcmask 400384  }
 0x2d5   : > { %v674_v31 = vsel %vm671_vm5, %v664_v30, %v647_v17  ;;  %vm1522_vm5 = vcmask 408576  }
 0x2db   : > { %v652_v23 = vpop.permute.xlu0 %651 }
 0x2e3   : > { %v654_v24 = vpop.permute.xlu1 %653 }
 0x2e4   : > { %v658_v25 = vsel %vm657_vm12, %v652_v23, %v654_v24  ;;  %v659_v26 = vsel %vm657_vm12, %v654_v24, %v656_v22  ;;  %vm696_vm12 = vcmp.eq.s32.totalorder %v693_v47, 1  ;;  %v700_v24 = vld [vmem:[%s1509_s4] sm:$0xf] }
 0x2e5   : > { %v672_v27 = vsel %vm669_vm15, %v658_v25, %v645_v3  ;;  %v673_v28 = vsel %vm670_vm8, %v659_v26, %v646_v10  ;;  %vm1519_vm15 = vcmask 146432   ;;  %vm1520_vm8 = vcmask 154624  }
 0x2e6   : > { %678 = vrot.lane.b32.xlu2 %v672_v27, %s1157_s13  ;;  %680 = vrot.lane.b32.xlu0 %v673_v28, %s1157_s13 }
 0x2ee   : > { %682 = vrot.lane.b32.xlu2 %v674_v31, %s1157_s13 }
 0x340   : > { %v679_v39 = vpop.permute.xlu2 %678 }
 0x341   : > { %v689_v41 = vsel %vm472_vm13, 0.0, %v679_v39 }
 0x342   : > { %v697_v43 = vsel %vm694_vm0, %v689_v41, %v672_v27  ;;  %vm1525_vm0 = vmmov %vm1519_vm15 }
 0x343   : > { %781 = vrot.lane.b32.xlu0 %v697_v43, %s1152_s10 }
 0x348   : > { %v683_v48 = vpop.permute.xlu2 %682 }
 0x358   : > { %v681_v44 = vpop.permute.xlu0 %680 }
 0x359   : > { %v684_v45 = vsel %vm472_vm13, %v679_v39, %v681_v44  ;;  %v685_v51 = vsel %vm472_vm13, %v681_v44, %v683_v48 }
 0x35a   : > { %v1392_v46 = vsel %vm695_vm10, %v684_v45, %v673_v28  ;;  %v1403_v52 = vsel %vm696_vm12, %v685_v51, %v674_v31 }
 0x35b   : > { %783 = vrot.lane.b32.xlu2 %v1392_v46, %s1152_s10  ;;  %v1107_v42 = vpack.i.bf16 %v1392_v46, %v697_v43 }
 0x35d   : > { %1108 = vrot.lane.b32.xlu0 %v1107_v42, %s1150_s8  ;;  %1098 = vrot.lane.b32.xlu1 %v1107_v42, %s1151_s9 }
 0x363   : > { %1113 = vrot.lane.b32.xlu2 %v1107_v42, %s1148_s30 }
 0x365   : > { %1123 = vrot.lane.b32.xlu0 %v1107_v42, %s1147_s29  ;;  %1103 = vrot.lane.b32.xlu1 %v1107_v42, %s1149_s7 }
 0x36b   : > { %775 = vrot.lane.b32.xlu2 %v1403_v52, %s1151_s9 }
 0x36d   : > { %1128 = vrot.lane.b32.xlu0 %v1107_v42, %s1145_s27  ;;  %1118 = vrot.lane.b32.xlu1 %v1107_v42, %s1146_s28 }
 0x373   : > { %753 = vrot.lane.b32.xlu2 %v1403_v52, %s1149_s7  ;;  %s251_s7 = scalar_lea.vmem %s1511_s6, %s1039_s23 }
 0x375   : > { %743 = vrot.lane.b32.xlu0 %v1403_v52, %s1148_s30  ;;  %785 = vrot.lane.b32.xlu1 %v1403_v52, %s1152_s10 }
 0x37b   : > { %721 = vrot.lane.b32.xlu2 %v1403_v52, %s1146_s28 }
 0x37d   : > { %709 = vrot.lane.b32.xlu0 %v1403_v52, %s1145_s27  ;;  %763 = vrot.lane.b32.xlu1 %v1403_v52, %s1150_s8 }
 0x383   : > { %833 = vperm.xlu2 %1096, %v701_v53  }
 0x385   : > { %731 = vrot.lane.b32.xlu1 %v1403_v52, %s1147_s29 }
 0x3b5   : > { %v782_v36 = vpop.permute.xlu0 %781  ;;  %v784_v54 = vpop.permute.xlu2 %783 }
 0x3b6   : > { %v787_v34 = vsel %vm411_vm9, %v782_v36, %v784_v54 }
 0x3b7   : > { %1031 = vmatpush.msk.msra.mxu3 %vm454_vm6, %v787_v34 }
 0x3bd   : > { %v1429_v58 = vpop.permute.xlu2 %1113 }
 0x3be   : > { %v1115_v3 = vunpack.i.l.bf16 %v1429_v58  ;;  %v1116_v30 = vunpack.i.h.bf16 %v1429_v58 }
 0x3c0   : > { %v748_v9 = vsel %vm338_vm2, 0.0, %v1115_v3  ;;  %v745_v53 = vsel %vm338_vm2, %v1115_v3, %v1116_v30 }
 0x3c1   : > { %v799_v13 = vrot.slane %v748_v9, 4 }
 0x3c5   : > { %v776_v15 = vpop.permute.xlu2 %775 }
 0x3c6   : > { %v780_v31 = vsel %vm1522_vm5, %v776_v15, 0.0 }
 0x3c7   : > { %v815_v40 = vrot.slane %v780_v31, 4 }
 0x3cd   : > { %v754_v29 = vpop.permute.xlu2 %753 }
 0x3ce   : > { %v758_v35 = vsel %vm1523_vm14, %v754_v29, 0.0 }
 0x3cf   : > { %v1109_v50 = vpop.permute.xlu0 %1108  ;;  %v1099_v55 = vpop.permute.xlu1 %1098  ;;  %v808_v44 = vrot.slane %v758_v35, 4 }
 0x3d0   : > { %v1111_v56 = vunpack.i.h.bf16 %v1109_v50  ;;  %v1110_v33 = vunpack.i.l.bf16 %v1109_v50  ;;  %v1101_v49 = vunpack.i.h.bf16 %v1099_v55  ;;  %v1100_v57 = vunpack.i.l.bf16 %v1099_v55 }
 0x3d2   : > { %v777_v38 = vsel %vm393_vm1, %v1100_v57, %v1101_v49  ;;  %v765_v60 = vsel %vm373_vm7, %v1110_v33, %v1111_v56  ;;  %v778_v39 = vsel %vm393_vm1, %v1101_v49, %v776_v15  ;;  %v800_v49 = vrot.slane %v745_v53, 4  ;;  %vm1526_vm1 = vmmov %vm1520_vm8 }
 0x3d3   : > { %v813_v59 = vrot.slane %v777_v38, 4  ;;  %v814_v42 = vrot.slane %v778_v39, 4 }
 0x3d5   : > { %v828_v2 = vsel %vm454_vm6, %v765_v60, %v813_v59  ;;  %v722_v58 = vpop.permute.xlu2 %721 }
 0x3d6   : > { %858 = vmatpush.msra.mxu3 %v828_v2 }
 0x3d7   : > { %v1434_v4 = vpop.permute.xlu0 %1123  ;;  %v1104_v5 = vpop.permute.xlu1 %1103 }
 0x3d8   : > { %v1125_v6 = vunpack.i.l.bf16 %v1434_v4  ;;  %v1106_v7 = vunpack.i.h.bf16 %v1104_v5  ;;  %v1105_v8 = vunpack.i.l.bf16 %v1104_v5 }
 0x3da   : > { %v755_v10 = vsel %vm355_vm4, %v1105_v8, %v1106_v7  ;;  %v738_v12 = vsel %vm319_vm11, 0.0, %v1125_v6  ;;  %v756_v41 = vsel %vm355_vm4, %v1106_v7, %v754_v29  ;;  %vm1527_vm4 = vmmov %vm1525_vm0 }
 0x3db   : > { %v806_v11 = vrot.slane %v755_v10, 4  ;;  %v822_v18 = vsel %vm454_vm6, %v738_v12, %v799_v13  ;;  %v807_v47 = vrot.slane %v756_v41, 4 }
 0x3dd   : > { %v825_v14 = vsel %vm454_vm6, %v697_v43, %v806_v11  ;;  %v1126_v43 = vunpack.i.h.bf16 %v1434_v4  ;;  %v826_v33 = vsel %vm454_vm6, %v1392_v46, %v807_v47  ;;  %v834_v11 = vpop.permute.xlu2 %833 }
 0x3de   : > { %859 = vmatpush.msra.mxu3 %v825_v14 }
 0x3df   : > { %v1129_v16 = vpop.permute.xlu0 %1128  ;;  %v1119_v17 = vpop.permute.xlu1 %1118  ;;  %v733_v55 = vsel %vm319_vm11, %v1125_v6, %v1126_v43 }
 0x3e0   : > { %v1130_v19 = vunpack.i.l.bf16 %v1129_v16  ;;  %v1120_v20 = vunpack.i.l.bf16 %v1119_v17  ;;  %860 = vmatpush.msra.mxu3 %v822_v18  ;;  %v1121_v37 = vunpack.i.h.bf16 %v1119_v17  ;;  %v1131_v50 = vunpack.i.h.bf16 %v1129_v16 }
 0x3e1   : > { %v823_v60 = vsel %vm454_vm6, %v733_v55, %v800_v49 }
 0x3e2   : > { %v726_v21 = vsel %vm1519_vm15, 0.0, %v1120_v20  ;;  %v716_v23 = vsel %vm1520_vm8, 0.0, %v1130_v19  ;;  %v723_v36 = vsel %vm1525_vm0, %v1120_v20, %v1121_v37  ;;  %v711_v2 = vsel %vm1526_vm1, %v1130_v19, %v1131_v50 }
 0x3e3   : > { %v792_v22 = vrot.slane %v726_v21, 4  ;;  %v793_v57 = vrot.slane %v723_v36, 4  ;;  %v724_v3 = vsel %vm1527_vm4, %v1121_v37, %v722_v58 }
 0x3e4   : > { %v794_v8 = vrot.slane %v724_v3, 4 }
 0x3e5   : > { %v819_v25 = vsel %vm454_vm6, %v716_v23, %v792_v22  ;;  %v820_v5 = vsel %vm454_vm6, %v711_v2, %v793_v57 }
 0x3e6   : > { %861 = vmatpush.msra.mxu3 %v819_v25 }
 0x3e7   : > { %v786_v26 = vpop.permute.xlu1 %785  ;;  %1032 = vmatmul.msk.f32.vlgmr.msra.gmra.mxu3 %vm472_vm13, %v700_v24  ;;  %v744_v32 = vpop.permute.xlu0 %743 }
 0x3e8   : > { %v788_v27 = vsel %vm411_vm9, %v784_v54, %v786_v26  ;;  %v790_v28 = vsel %vm1521_vm3, %v786_v26, 0.0  ;;  %vm1524_vm9 = vcmask 416768   ;;  %v746_v38 = vsel %vm338_vm2, %v1116_v30, %v744_v32 }
 0x3e9   : > { %1033 = vmatpush.msk.msrb.mxu0 %vm454_vm6, %v788_v27  ;;  %1035 = vmatpush.msk.msrb.mxu1 %vm454_vm6, %v790_v28  ;;  %v801_v4 = vrot.slane %v746_v38, 4  ;;  %vm1529_vm2 = vcmask 551936  }
 0x3ea   : > { %vm1531_vm15 = vmmov %vm1529_vm2 }
 0x3ef   : > { %v764_v45 = vpop.permute.xlu1 %763  ;;  %v710_v59 = vpop.permute.xlu0 %709 }
 0x3f0   : > { %v766_v48 = vsel %vm373_vm7, %v1111_v56, %v764_v45  ;;  %v770_v51 = vsel %vm1524_vm9, %v764_v45, 0.0  ;;  %v827_v56 = vsel %vm454_vm6, %v1403_v52, %v808_v44  ;;  %vm1528_vm7 = vmmov %vm1526_vm1 }
 0x3f1   : > { %v829_v54 = vsel %vm454_vm6, %v766_v48, %v814_v42  ;;  %v830_v34 = vsel %vm454_vm6, %v770_v51, %v815_v40  ;;  %v712_v52 = vsel %vm1528_vm7, %v1131_v50, %v710_v59 }
 0x3f2   : > { %878 = vmatpush.msrb.mxu0 %v829_v54  ;;  %898 = vmatpush.msrb.mxu1 %v830_v34  ;;  %v821_v9 = vsel %vm454_vm6, %v712_v52, %v794_v8 }
 0x3f4   : > { %879 = vmatpush.msrb.mxu0 %v826_v33  ;;  %899 = vmatpush.msrb.mxu1 %v827_v56 }
 0x3f6   : > { %880 = vmatpush.msrb.mxu0 %v823_v60 }
 0x3f7   : > { %v732_v46 = vpop.permute.xlu1 %731 }
 0x3f8   : > { %v734_v6 = vsel %vm319_vm11, %v1126_v43, %v732_v46  ;;  %881 = vmatpush.msrb.mxu0 %v820_v5  ;;  %vm1530_vm11 = vmmov %vm1529_vm2 }
 0x3f9   : > { %1034 = vmatmul.msk.f32.vlgmr.msrb.gmra.mxu0 %vm472_vm13, %v700_v24  ;;  %v824_v7 = vsel %vm454_vm6, %v734_v6, %v801_v4 }
 0x3fa   : > { %900 = vmatpush.msrb.mxu1 %v824_v7 }
 0x3fc   : > { %901 = vmatpush.msrb.mxu1 %v821_v9 }
 0x3fd   : > { %1036 = vmatmul.msk.f32.vlgmr.msrb.gmra.mxu1 %vm472_vm13, %v700_v24 }
 0x46a   : > { %v863_v10 = vpop.f32.mrf.mxu3 }
 0x46b   : > { %v864_v12 = vadd.f32 %v863_v10, %v834_v11 }
 0x46d   : > { %v916_v14 = vmul.f32 %v864_v12, %v864_v12  ;;  %v906_v16 = vmul.f32 %v864_v12, %v1354_v62 }
 0x46f   : > { %v919_v22 = vmul.f32 %v916_v14, %v1354_v62  ;;  %v909_v26 = vsel %vm454_vm6, %v906_v16, 0.0 }
 0x471   : > { %v922_v31 = vsel %vm454_vm6, %v919_v22, 0.0 }
 0x476   : > { %v883_v13 = vpop.f32.mrf.mxu0 }
 0x477   : > { %v884_v15 = vadd.f32 %v883_v13, %v834_v11 }
 0x479   : > { %v907_v17 = vmul.f32 %v884_v15, %v1356_v63  ;;  %v917_v18 = vmul.f32 %v884_v15, %v884_v15 }
 0x47a   : > { %v903_v19 = vpop.f32.mrf.mxu1 }
 0x47b   : > { %v904_v20 = vadd.f32 %v903_v19, %v834_v11  ;;  %v910_v21 = vsel %vm454_vm6, %v907_v17, 0.0  ;;  %v920_v23 = vmul.f32 %v917_v18, %v1356_v63 }
 0x47c   : > { %v911_v28 = vadd.f32 %v910_v21, %v909_v26 }
 0x47d   : > { %v918_v24 = vmul.f32 %v904_v20, %v904_v20  ;;  %v908_v25 = vmul.f32 %v904_v20, %v1352_v61  ;;  %v923_v27 = vsel %vm454_vm6, %v920_v23, 0.0 }
 0x47e   : > { %v924_v35 = vadd.f32 %v923_v27, %v922_v31 }
 0x47f   : > { %v912_v29 = vsel %vm1529_vm2, %v908_v25, 0.0  ;;  %v921_v30 = vmul.f32 %v918_v24, %v1352_v61 }
 0x480   : > { %v913_v32 = vadd.f32 %v912_v29, %v911_v28 }
 0x481   : > { %v925_v62 = vsel %vm1530_vm11, %v921_v30, 0.0 }
 0x482   : > { %914 = vadd.xlane.f32.xlu1 %v913_v32  ;;  %v926_v63 = vadd.f32 %v925_v62, %v924_v35 }
 0x484   : > { %927 = vadd.xlane.f32.xlu0 %v926_v63 }
 0x4f5   : > { %v915_v37 = vpop.xlane.xlu1 %914 }
 0x4f6   : > { %v929_v39 = vmul.f32 0.00390625, %v915_v37 }
 0x4f7   : > { %v928_v41 = vpop.xlane.xlu0 %927 }
 0x4f8   : > { %v930_v43 = vmul.f32 0.00390625, %v928_v41  ;;  %v931_v40 = vmul.f32 %v929_v39, %v929_v39  ;;  %v934_v36 = vsub.f32 %v884_v15, %v929_v39  ;;  %v935_v54 = vsub.f32 %v904_v20, %v929_v39 }
 0x4f9   : > { %v933_v50 = vsub.f32 %v864_v12, %v929_v39 }
 0x4fa   : > { %v932_v44 = vsub.f32 %v930_v43, %v931_v40 }
 0x4fc   : > { %v936_v45 = vadd.f32 1e-05, %v932_v44 }
 0x4fe   : > { %1135 = vrsqrt.f32 %v936_v45  ;;  %vm943_vm10 = vweird.f32 %v936_v45 }
 0x504   : > { %v1136_v42 = vpop.eup %1135 }
 0x505   : > { %v938_v61 = vmul.f32 %v1136_v42, %v936_v45  ;;  %vm944_vm13 = vweird.f32 %v1136_v42 }
 0x506   : > { %vm945_vm12 = vmor %vm943_vm10, %vm944_vm13 }
 0x507   : > { %v939_v47 = vmul.f32 %v1136_v42, %v938_v61 }
 0x509   : > { %v940_v48 = vmul.f32 0.5, %v939_v47 }
 0x50b   : > { %v941_v51 = vsub.f32 1.5, %v940_v48 }
 0x50d   : > { %v942_v53 = vmul.f32 %v1136_v42, %v941_v51 }
 0x50f   : > { %v946_v34 = vsel %vm945_vm12, %v1136_v42, %v942_v53 }
 0x510   : > { %v948_v55 = vmul.f32 %v946_v34, %v934_v36  ;;  %v949_v33 = vmul.f32 %v946_v34, %v935_v54  ;;  %v947_v56 = vmul.f32 %v946_v34, %v933_v50 }
 0x512   : > { %v952_v49 = vrot.slane %v948_v55, 4  ;;  %v956_v57 = vadd.f32 %v949_v33, %v1211_v1 }
 0x514   : > { %v953_v38 = vsel %vm454_vm6, %v947_v56, %v952_v49  ;;  %958 = vst.msk [vmem:[%s251_s7 + $0x8] sm:$0xf] %vm1531_vm15, %v956_v57 }
 0x515   : > { %v955_v58 = vadd.f32 %v953_v38, %v1209_v0 }
 0x517   : > { %957 = vst [vmem:[%s251_s7] sm:$0xff] %v955_v58 }
 0x518 PF: > { %s16_s21 = sadd.s32 1, %s1143_s21  }
 0x519   : > { %p13_p4 = scmp.ge.s32.totalorder %s16_s21, 4  }
 0x51b   :  { %15 = sbr.rel (!%p13_p4) target bundleno = 1 (0x1), region = 87 }

</bundles_post_ra>
